<compile_context>
chip_gen: v6e
topology: v6e:2x2x1
jax: 0.10.0
libtpu: 0.0.40
codegen_flags: <defaults>
</compile_context>

<pallas_src>
import functools
import math

import jax
import jax.numpy as jnp
import numpy as np
from jax import lax
from jax.experimental import pallas as pl
from jax.experimental.pallas import tpu as pltpu


def _fused_conv_kernel(w_ref, x_ref, o_ref, *, taps, hw):
    """One batch image per grid step; shift-and-accumulate over conv taps.

    w_ref: (T, out_c, C)   per-tap weight matrices (resident, fetched once)
    x_ref: (1, C, HWp)     flattened image + zero tail (so tap shifts stay in bounds)
    o_ref: (1, out_c, HW)  lane-dense output block
    taps:  static tuple of (tap_index, flat_shift = kh*W + kw)
    """
    acc = jnp.zeros(o_ref.shape[1:], jnp.float32)          # (out_c, HW) f32
    for t, d in taps:                                       # static python loop
        xw = x_ref[0, :, d:d + hw]                          # shifted window (C, HW)
        acc = acc + jnp.dot(w_ref[t], xw, preferred_element_type=jnp.float32)
    o_ref[0] = acc.astype(o_ref.dtype)


def pallas_fused_conv(w_taps, x_flat, *, taps, hw, out_dtype):
    """(T, out_c, C) taps x (N, C, HWp) shifted-flat images -> (N, out_c, hw)."""
    N, C, HWp = x_flat.shape
    T, out_c, _ = w_taps.shape
    in_bytes = x_flat.dtype.itemsize
    out_bytes = jnp.dtype(out_dtype).itemsize

    # VMEM footprint: double-buffered input/output blocks + resident weights
    # + the f32 accumulator.  Tiny for typical conv layer shapes.
    needed = (2 * C * HWp * in_bytes
              + 2 * T * out_c * C * in_bytes
              + 2 * out_c * hw * out_bytes
              + out_c * hw * 4)
    if needed > 40 * 1024 * 1024:
        # TODO(synk): tile the flattened spatial axis (halo of (kh-1)*W + kw-1
        # columns) for images too large for a single VMEM-resident slab.
        raise ValueError("image too large for the single-block fused conv kernel")
    vmem_limit = int(min(max(4 * needed, 8 * 1024 * 1024), 40 * 1024 * 1024))

    cost = pl.CostEstimate(
        flops=2 * N * hw * C * out_c * max(len(taps), 1),
        transcendentals=0,
        bytes_accessed=(N * C * HWp * in_bytes + T * out_c * C * in_bytes
                        + N * out_c * hw * out_bytes),
    )

    kernel = functools.partial(_fused_conv_kernel, taps=taps, hw=hw)

    # NOTE: grid has only N steps, so deeper (Buffered(3)) activation pipelining
    # buys nothing at these shapes; with N even the two v7x TensorCores split
    # the "parallel" batch axis evenly.
    return pl.pallas_call(
        kernel,
        out_shape=jax.ShapeDtypeStruct((N, out_c, hw), out_dtype),
        grid_spec=pltpu.PrefetchScalarGridSpec(
            num_scalar_prefetch=0,
            grid=(N,),
            in_specs=[
                # Per-tap weights: constant block index -> fetched once, resident.
                pl.BlockSpec((T, out_c, C), lambda n: (0, 0, 0)),
                # One flattened image per grid step.  Last two block dims equal the
                # full array extent, so no (8,128) padding constraint applies.
                pl.BlockSpec((1, C, HWp), lambda n: (n, 0, 0)),
            ],
            out_specs=pl.BlockSpec((1, out_c, hw), lambda n: (n, 0, 0)),
        ),
        compiler_params=pltpu.CompilerParams(
            dimension_semantics=("parallel",),
            vmem_limit_bytes=vmem_limit,
        ),
        cost_estimate=cost,
    )(w_taps, x_flat)


class MaskedConv2dPallas:
    """JAX/Pallas re-implementation of MaskedConv2d (forward path only)."""

    def __init__(self, in_c, out_c, kernel_size, stride=1, padding=0, dilation=1,
                 groups=1, bias=True, compute_dtype=jnp.bfloat16,
                 key=jax.random.PRNGKey(0)):
        assert groups == 1 and dilation == 1
        assert padding == 0  # PyTorch forward's as_strided strides assume this
        self.in_channels = in_c
        self.out_channels = out_c
        self.kernel_size = kernel_size
        self.stride = stride
        self.padding = padding
        self.compute_dtype = compute_dtype

        k_h, k_w = kernel_size
        fan_in = (in_c // groups) * k_h * k_w
        kw_key, kb_key = jax.random.split(key)

        # kaiming_uniform_(a=sqrt(5)) -> U(-1/sqrt(fan_in), 1/sqrt(fan_in))
        bound = 1.0 / math.sqrt(fan_in)
        self.weight4d = jax.random.uniform(
            kw_key, (out_c, in_c // groups, k_h, k_w),
            minval=-bound, maxval=bound, dtype=jnp.float32)
        if bias:
            self.bias = jax.random.uniform(
                kb_key, (out_c,), minval=-bound, maxval=bound,
                dtype=jnp.float32)          # unused in forward (matches PyTorch)
        else:
            self.bias = None
        self.threshold = jnp.zeros((1,), jnp.float32)   # unused in forward
        self.mask = jnp.ones((in_c, k_h, k_w), jnp.float32)
        self.reinit_weight()

    def reinit_weight(self):
        k_h, k_w = self.kernel_size
        in_c = self.in_channels
        mask = np.asarray(self.mask) != 0                 # (C, kh, kw), static host-side
        self.boolmask = mask.reshape(-1)
        self.idx = jnp.asarray(np.nonzero(self.boolmask)[0], jnp.int32)

        # Masked entries contribute exactly zero, so zeroing the weights is
        # numerically identical to the PyTorch index_select/boolmask path.
        w_masked = np.asarray(self.weight4d) * mask[None].astype(np.float32)

        # Static channel pruning: drop channels whose every tap is masked.
        kept = np.nonzero(mask.any(axis=(1, 2)))[0]
        if kept.size == 0:
            kept = np.arange(in_c)           # degenerate: weights are all zero anyway
        self._kept_channels = kept
        self._prune_channels = kept.size < in_c

        # Static tap pruning: drop (kh, kw) taps masked for all kept channels.
        self._active_taps = [(kh, kw) for kh in range(k_h) for kw in range(k_w)
                             if mask[kept, kh, kw].any()]
        if not self._active_taps:
            self._active_taps = [(0, 0)]     # weights are all zero -> output is zero

        # (T_active, out_c, C_kept) per-tap weight matrices, fed to the MXU in
        # compute_dtype (bf16) with f32 accumulation.
        w_sel = w_masked[:, kept, :, :]      # (out_c, Ck, kh, kw)
        w_taps = np.stack([w_sel[:, :, kh, kw] for kh, kw in self._active_taps], axis=0)
        self.w_taps = jnp.asarray(w_taps, self.compute_dtype)

    def forward(self, x):
        N, C, H, W = x.shape
        k_h, k_w = self.kernel_size
        s = self.stride
        out_h = (H - k_h) // s + 1
        out_w = (W - k_w) // s + 1

        # Cast once to the MXU compute dtype (halves HBM traffic); static channel
        # pruning replaces the old post-hoc jnp.take gather over the im2col matrix.
        x_c = x.astype(self.compute_dtype)
        if self._prune_channels:
            x_c = x_c[:, self._kept_channels, :, :]
        ck = x_c.shape[1]

        # Flatten spatial dims and append a (kh-1)*W + (kw-1) zero tail so every
        # tap's shifted read x[:, d : d + H*W] stays in bounds.  This one small
        # prep copy replaces the materialized (C*kh*kw, N*OH*OW) im2col tensor.
        hw = H * W
        tail = (k_h - 1) * W + (k_w - 1)
        x_flat = jnp.pad(x_c.reshape(N, ck, hw), ((0, 0), (0, 0), (0, tail)))

        taps = tuple((t, kh * W + kw) for t, (kh, kw) in enumerate(self._active_taps))
        out_dtype = jnp.bfloat16 if x.dtype == jnp.bfloat16 else jnp.float32

        out_flat = pallas_fused_conv(self.w_taps, x_flat, taps=taps, hw=hw,
                                     out_dtype=out_dtype)      # (N, out_c, H*W)

        # Output already comes back in N-major / out_c / flat-spatial layout; just
        # pick the valid (and, for stride>1, subsampled) window - a small
        # output-sized slice copy, no NCHW transpose.
        out = out_flat.reshape(N, self.out_channels, H, W)
        out = out[:, :, ::s, ::s][:, :, :out_h, :out_w]
        return out.astype(x.dtype)

    __call__ = forward


if __name__ == "__main__":
    key = jax.random.PRNGKey(0)
    xkey, wkey = jax.random.split(key)

    N, C, H, W = 2, 4, 16, 16
    out_c = 8
    ksize = (3, 3)

    x = jax.random.normal(xkey, (N, C, H, W), dtype=jnp.float32)

    mod = MaskedConv2dPallas(C, out_c, ksize, stride=1, padding=0, key=wkey)
    fwd = jax.jit(mod.forward)
    out = jax.block_until_ready(fwd(x))

    # Pure-JAX reference (mask is all-ones per __init__, so the forward equals a
    # no-bias VALID conv with the original 4-D weight).
    ref = lax.conv_general_dilated(
        x, mod.weight4d, window_strides=(1, 1), padding="VALID",
        dimension_numbers=("NCHW", "OIHW", "NCHW"))
    assert out.shape == (N, out_c, H - 2, W - 2)
    # bf16 MXU inputs with f32 accumulation -> relaxed tolerance vs f32 reference.
    np.testing.assert_allclose(np.asarray(out), np.asarray(ref),
                               rtol=2e-2, atol=2e-2)

    print("KERNEL_OK")
</pallas_src>

<mosaic_0001>
module attributes {stable_mosaic.version = 11 : i64} {
  func.func @_fused_conv_kernel(%arg0: i32, %arg1: memref<9x8x4xbf16, #tpu.memory_space<vmem>>, %arg2: memref<1x4x290xbf16, #tpu.memory_space<vmem>>, %arg3: memref<1x8x256xf32, #tpu.memory_space<vmem>>) attributes {dimension_semantics = [#tpu.dimension_semantics<parallel>], iteration_bounds = array<i64: 2>, scalar_prefetch = 0 : i64, scratch_operands = 0 : i64, tpu.core_type = #tpu.core_type<tc>, window_params = [{pipeline_mode = #tpu.pipeline_mode<synchronous>, transform_indices = @transform_0, window_bounds = array<i64: 9, 8, 4>}, {transform_indices = @transform_1, window_bounds = array<i64: 1, 4, 290>}, {transform_indices = @transform_2, window_bounds = array<i64: 1, 8, 256>}]} {
    %cst = arith.constant 0.000000e+00 : f32
    %0 = vector.broadcast %cst : f32 to vector<8x256xf32>
    %c0 = arith.constant 0 : index
    %c0_0 = arith.constant 0 : index
    %c0_1 = arith.constant 0 : index
    %1 = vector.load %arg2[%c0, %c0_0, %c0_1] : memref<1x4x290xbf16, #tpu.memory_space<vmem>>, vector<1x4x256xbf16>
    %2 = vector.shape_cast %1 : vector<1x4x256xbf16> to vector<4x256xbf16>
    %c0_2 = arith.constant 0 : index
    %c0_3 = arith.constant 0 : index
    %c0_4 = arith.constant 0 : index
    %3 = vector.load %arg1[%c0_2, %c0_3, %c0_4] : memref<9x8x4xbf16, #tpu.memory_space<vmem>>, vector<1x8x4xbf16>
    %4 = vector.shape_cast %3 : vector<1x8x4xbf16> to vector<8x4xbf16>
    %cst_5 = arith.constant dense<0.000000e+00> : vector<8x256xf32>
    %5 = tpu.matmul %4, %2, %cst_5 {dimension_numbers = #tpu.dot_dimension_numbers<[1], [0], [0], [1], [0, 0, 1, 1], [], []>} : vector<8x4xbf16>, vector<4x256xbf16>, vector<8x256xf32> -> vector<8x256xf32>
    %6 = arith.addf %0, %5 : vector<8x256xf32>
    %c0_6 = arith.constant 0 : index
    %c0_7 = arith.constant 0 : index
    %c1 = arith.constant 1 : index
    %7 = vector.load %arg2[%c0_6, %c0_7, %c1] : memref<1x4x290xbf16, #tpu.memory_space<vmem>>, vector<1x4x256xbf16>
    %8 = vector.shape_cast %7 : vector<1x4x256xbf16> to vector<4x256xbf16>
    %c1_8 = arith.constant 1 : index
    %c0_9 = arith.constant 0 : index
    %c0_10 = arith.constant 0 : index
    %9 = vector.load %arg1[%c1_8, %c0_9, %c0_10] : memref<9x8x4xbf16, #tpu.memory_space<vmem>>, vector<1x8x4xbf16>
    %10 = vector.shape_cast %9 : vector<1x8x4xbf16> to vector<8x4xbf16>
    %cst_11 = arith.constant dense<0.000000e+00> : vector<8x256xf32>
    %11 = tpu.matmul %10, %8, %cst_11 {dimension_numbers = #tpu.dot_dimension_numbers<[1], [0], [0], [1], [0, 0, 1, 1], [], []>} : vector<8x4xbf16>, vector<4x256xbf16>, vector<8x256xf32> -> vector<8x256xf32>
    %12 = arith.addf %6, %11 : vector<8x256xf32>
    %c0_12 = arith.constant 0 : index
    %c0_13 = arith.constant 0 : index
    %c2 = arith.constant 2 : index
    %13 = vector.load %arg2[%c0_12, %c0_13, %c2] : memref<1x4x290xbf16, #tpu.memory_space<vmem>>, vector<1x4x256xbf16>
    %14 = vector.shape_cast %13 : vector<1x4x256xbf16> to vector<4x256xbf16>
    %c2_14 = arith.constant 2 : index
    %c0_15 = arith.constant 0 : index
    %c0_16 = arith.constant 0 : index
    %15 = vector.load %arg1[%c2_14, %c0_15, %c0_16] : memref<9x8x4xbf16, #tpu.memory_space<vmem>>, vector<1x8x4xbf16>
    %16 = vector.shape_cast %15 : vector<1x8x4xbf16> to vector<8x4xbf16>
    %cst_17 = arith.constant dense<0.000000e+00> : vector<8x256xf32>
    %17 = tpu.matmul %16, %14, %cst_17 {dimension_numbers = #tpu.dot_dimension_numbers<[1], [0], [0], [1], [0, 0, 1, 1], [], []>} : vector<8x4xbf16>, vector<4x256xbf16>, vector<8x256xf32> -> vector<8x256xf32>
    %18 = arith.addf %12, %17 : vector<8x256xf32>
    %c0_18 = arith.constant 0 : index
    %c0_19 = arith.constant 0 : index
    %c16 = arith.constant 16 : index
    %19 = vector.load %arg2[%c0_18, %c0_19, %c16] : memref<1x4x290xbf16, #tpu.memory_space<vmem>>, vector<1x4x256xbf16>
    %20 = vector.shape_cast %19 : vector<1x4x256xbf16> to vector<4x256xbf16>
    %c3 = arith.constant 3 : index
    %c0_20 = arith.constant 0 : index
    %c0_21 = arith.constant 0 : index
    %21 = vector.load %arg1[%c3, %c0_20, %c0_21] : memref<9x8x4xbf16, #tpu.memory_space<vmem>>, vector<1x8x4xbf16>
    %22 = vector.shape_cast %21 : vector<1x8x4xbf16> to vector<8x4xbf16>
    %cst_22 = arith.constant dense<0.000000e+00> : vector<8x256xf32>
    %23 = tpu.matmul %22, %20, %cst_22 {dimension_numbers = #tpu.dot_dimension_numbers<[1], [0], [0], [1], [0, 0, 1, 1], [], []>} : vector<8x4xbf16>, vector<4x256xbf16>, vector<8x256xf32> -> vector<8x256xf32>
    %24 = arith.addf %18, %23 : vector<8x256xf32>
    %c0_23 = arith.constant 0 : index
    %c0_24 = arith.constant 0 : index
    %c17 = arith.constant 17 : index
    %25 = vector.load %arg2[%c0_23, %c0_24, %c17] : memref<1x4x290xbf16, #tpu.memory_space<vmem>>, vector<1x4x256xbf16>
    %26 = vector.shape_cast %25 : vector<1x4x256xbf16> to vector<4x256xbf16>
    %c4 = arith.constant 4 : index
    %c0_25 = arith.constant 0 : index
    %c0_26 = arith.constant 0 : index
    %27 = vector.load %arg1[%c4, %c0_25, %c0_26] : memref<9x8x4xbf16, #tpu.memory_space<vmem>>, vector<1x8x4xbf16>
    %28 = vector.shape_cast %27 : vector<1x8x4xbf16> to vector<8x4xbf16>
    %cst_27 = arith.constant dense<0.000000e+00> : vector<8x256xf32>
    %29 = tpu.matmul %28, %26, %cst_27 {dimension_numbers = #tpu.dot_dimension_numbers<[1], [0], [0], [1], [0, 0, 1, 1], [], []>} : vector<8x4xbf16>, vector<4x256xbf16>, vector<8x256xf32> -> vector<8x256xf32>
    %30 = arith.addf %24, %29 : vector<8x256xf32>
    %c0_28 = arith.constant 0 : index
    %c0_29 = arith.constant 0 : index
    %c18 = arith.constant 18 : index
    %31 = vector.load %arg2[%c0_28, %c0_29, %c18] : memref<1x4x290xbf16, #tpu.memory_space<vmem>>, vector<1x4x256xbf16>
    %32 = vector.shape_cast %31 : vector<1x4x256xbf16> to vector<4x256xbf16>
    %c5 = arith.constant 5 : index
    %c0_30 = arith.constant 0 : index
    %c0_31 = arith.constant 0 : index
    %33 = vector.load %arg1[%c5, %c0_30, %c0_31] : memref<9x8x4xbf16, #tpu.memory_space<vmem>>, vector<1x8x4xbf16>
    %34 = vector.shape_cast %33 : vector<1x8x4xbf16> to vector<8x4xbf16>
    %cst_32 = arith.constant dense<0.000000e+00> : vector<8x256xf32>
    %35 = tpu.matmul %34, %32, %cst_32 {dimension_numbers = #tpu.dot_dimension_numbers<[1], [0], [0], [1], [0, 0, 1, 1], [], []>} : vector<8x4xbf16>, vector<4x256xbf16>, vector<8x256xf32> -> vector<8x256xf32>
    %36 = arith.addf %30, %35 : vector<8x256xf32>
    %c0_33 = arith.constant 0 : index
    %c0_34 = arith.constant 0 : index
    %c32 = arith.constant 32 : index
    %37 = vector.load %arg2[%c0_33, %c0_34, %c32] : memref<1x4x290xbf16, #tpu.memory_space<vmem>>, vector<1x4x256xbf16>
    %38 = vector.shape_cast %37 : vector<1x4x256xbf16> to vector<4x256xbf16>
    %c6 = arith.constant 6 : index
    %c0_35 = arith.constant 0 : index
    %c0_36 = arith.constant 0 : index
    %39 = vector.load %arg1[%c6, %c0_35, %c0_36] : memref<9x8x4xbf16, #tpu.memory_space<vmem>>, vector<1x8x4xbf16>
    %40 = vector.shape_cast %39 : vector<1x8x4xbf16> to vector<8x4xbf16>
    %cst_37 = arith.constant dense<0.000000e+00> : vector<8x256xf32>
    %41 = tpu.matmul %40, %38, %cst_37 {dimension_numbers = #tpu.dot_dimension_numbers<[1], [0], [0], [1], [0, 0, 1, 1], [], []>} : vector<8x4xbf16>, vector<4x256xbf16>, vector<8x256xf32> -> vector<8x256xf32>
    %42 = arith.addf %36, %41 : vector<8x256xf32>
    %c0_38 = arith.constant 0 : index
    %c0_39 = arith.constant 0 : index
    %c33 = arith.constant 33 : index
    %43 = vector.load %arg2[%c0_38, %c0_39, %c33] : memref<1x4x290xbf16, #tpu.memory_space<vmem>>, vector<1x4x256xbf16>
    %44 = vector.shape_cast %43 : vector<1x4x256xbf16> to vector<4x256xbf16>
    %c7 = arith.constant 7 : index
    %c0_40 = arith.constant 0 : index
    %c0_41 = arith.constant 0 : index
    %45 = vector.load %arg1[%c7, %c0_40, %c0_41] : memref<9x8x4xbf16, #tpu.memory_space<vmem>>, vector<1x8x4xbf16>
    %46 = vector.shape_cast %45 : vector<1x8x4xbf16> to vector<8x4xbf16>
    %cst_42 = arith.constant dense<0.000000e+00> : vector<8x256xf32>
    %47 = tpu.matmul %46, %44, %cst_42 {dimension_numbers = #tpu.dot_dimension_numbers<[1], [0], [0], [1], [0, 0, 1, 1], [], []>} : vector<8x4xbf16>, vector<4x256xbf16>, vector<8x256xf32> -> vector<8x256xf32>
    %48 = arith.addf %42, %47 : vector<8x256xf32>
    %c0_43 = arith.constant 0 : index
    %c0_44 = arith.constant 0 : index
    %c34 = arith.constant 34 : index
    %49 = vector.load %arg2[%c0_43, %c0_44, %c34] : memref<1x4x290xbf16, #tpu.memory_space<vmem>>, vector<1x4x256xbf16>
    %50 = vector.shape_cast %49 : vector<1x4x256xbf16> to vector<4x256xbf16>
    %c8 = arith.constant 8 : index
    %c0_45 = arith.constant 0 : index
    %c0_46 = arith.constant 0 : index
    %51 = vector.load %arg1[%c8, %c0_45, %c0_46] : memref<9x8x4xbf16, #tpu.memory_space<vmem>>, vector<1x8x4xbf16>
    %52 = vector.shape_cast %51 : vector<1x8x4xbf16> to vector<8x4xbf16>
    %cst_47 = arith.constant dense<0.000000e+00> : vector<8x256xf32>
    %53 = tpu.matmul %52, %50, %cst_47 {dimension_numbers = #tpu.dot_dimension_numbers<[1], [0], [0], [1], [0, 0, 1, 1], [], []>} : vector<8x4xbf16>, vector<4x256xbf16>, vector<8x256xf32> -> vector<8x256xf32>
    %54 = arith.addf %48, %53 : vector<8x256xf32>
    %c0_48 = arith.constant 0 : index
    %c0_49 = arith.constant 0 : index
    %c0_50 = arith.constant 0 : index
    %55 = vector.load %arg3[%c0_48, %c0_49, %c0_50] : memref<1x8x256xf32, #tpu.memory_space<vmem>>, vector<1x8x256xf32>
    %56 = vector.shape_cast %55 : vector<1x8x256xf32> to vector<8x256xf32>
    %57 = vector.shape_cast %54 : vector<8x256xf32> to vector<1x8x256xf32>
    tpu.vector_store %arg3[%c0_48, %c0_49, %c0_50], %57 {strides = array<i32>} : memref<1x8x256xf32, #tpu.memory_space<vmem>>, vector<1x8x256xf32>,
    return
  }
  func.func @transform_0(%arg0: i32) -> (i32, i32, i32) {
    %c0_i32 = arith.constant 0 : i32
    %c0_i32_0 = arith.constant 0 : i32
    %c0_i32_1 = arith.constant 0 : i32
    %c0_i32_2 = arith.constant 0 : i32
    return %c0_i32, %c0_i32_0, %c0_i32_1 : i32, i32, i32
  }
  func.func @transform_1(%arg0: i32) -> (i32, i32, i32) {
    %c0_i32 = arith.constant 0 : i32
    %c0_i32_0 = arith.constant 0 : i32
    %c0_i32_1 = arith.constant 0 : i32
    return %arg0, %c0_i32, %c0_i32_0 : i32, i32, i32
  }
  func.func @transform_2(%arg0: i32) -> (i32, i32, i32) {
    %c0_i32 = arith.constant 0 : i32
    %c0_i32_0 = arith.constant 0 : i32
    %c0_i32_1 = arith.constant 0 : i32
    return %arg0, %c0_i32, %c0_i32_0 : i32, i32, i32
  }
}

</mosaic_0001>

<bundles_post_ra>
// kernel: forward.1
= control target key start
LH: loop header
LB: loop body
LE: loop exit
PB: predicated region body
PF: predicated region fallthrough
CT: control target
= control target key end

     0   :  { %s1009_s9 = smov 0   ;;  %s1122_s0 = inlined_call_operand.vmem [shape: bf16[9,8,4], index: 0, kind: input, shape index: {}]   ;;  %s1123_s1 = inlined_call_operand.vmem [shape: bf16[2,4,290], index: 1, kind: input, shape index: {}]   ;;  %s1124_s2 = inlined_call_operand.vmem [shape: f32[2,8,256], index: 2, kind: output, shape index: {}]  }
   0x1 LB: > { %s911_s10 = sadd.s32 4294967295, %s982_s9   ;;  %p915_p0 = scmp.ge.s32.totalorder %s982_s9, 1  ;;  %s982_s9 = sphi %s1009_s9, %s12_s9  }
   0x2   : > { %p112_p1 = scmp.lt.s32.totalorder %s982_s9, 3 }
   0x4   : > { %p113_p2 = pnand %p915_p0, %p112_p1 }
   0x5   : > { %p134_p3 = scmp.lt.s32.totalorder (!%p113_p2), %s911_s10, 1  ;;  %s985_s15 = smov (!%p113_p2), 126  }
   0x6   : > { %116 = sbr.rel (%p113_p2) target bundleno = 383 (0x17f), region = 28  ;;  %s986_s16 = smov (!%p113_p2), 127  }
   0x7   : > { %s987_s17 = smov (!%p113_p2), 112   ;;  %s989_s20 = smov (!%p113_p2), 111  }
   0x8   : > { %s990_s21 = smov (!%p113_p2), 110   ;;  %s991_s22 = smov (!%p113_p2), 96  }
   0x9   : > { %s992_s23 = smov (!%p113_p2), 95   ;;  %s993_s24 = smov (!%p113_p2), 94  }
   0xb   : > { %v155_v0 = vlaneseq  ;;  %v984_v1 = vmov 1983009808   ;;  %s1126_s10 = smov (!%p134_p3, %s911_s10), 1  ;;  %vm180_vm0 = vcmask 1041408   ;;  %v988_v19 = vmov 0  }
   0xc   : > { %v153_v2 = vunpack.c.l.s4 %v984_v1  ;;  %s949_s11 = smul.u32 6, %s1126_s10  ;;  %219 = vmatprep.mubr.bf16.mxu0 %v988_v19  ;;  %278 = vmatprep.mubr.bf16.mxu1 %v988_v19  ;;  %v146_v25 = vld [vmem:[%s1122_s0] sm:$0xf]  ;;  %vm176_vm1 = vcmask 31744   ;;  %vm173_vm2 = vcmask 1039360   ;;  %vm313_vm3 = vcmask 1031168  }
   0xd   : > { %v156_v3 = vshrl.u32 %v155_v0, 7  ;;  %v919_v60 = vld [vmem:[%s1122_s0 + $0x4] sm:$0xf]  ;;  %vm394_vm4 = vcmask 916480   ;;  %vm475_vm5 = vcmask 908288   ;;  %vm556_vm6 = vcmask 900096  }
   0xe   : > { %v154_v4 = vunpack.c.0.s8 %v153_v2  ;;  %s1025_s14 = scalar_lea.vmem %s1123_s1, %s949_s11  ;;  %vm637_vm7 = vcmask 785408   ;;  %vm718_vm8 = vcmask 777216   ;;  %vm799_vm9 = vcmask 769024  }
   0xf   : > { %v287_v6 = vld [vmem:[%s1025_s14] sm:$0x3f] }
  0x10   : > { %v1020_v5 = vsub.s32 %v154_v4, %v156_v3  ;;  %v147_v7 = vld [vmem:[%s1025_s14] sm:$0x3f]  ;;  %v291_v12 = vcombine.high %v287_v6, %v287_v6 }
  0x11   : > { %v368_v8 = vld [vmem:[%s1025_s14] sm:$0x3f]  ;;  %v151_v11 = vcombine.high %v147_v7, %v147_v7 }
  0x12   : > { %v298_v9 = vrot.slane %v287_v6, %v1020_v5  ;;  %v158_v10 = vrot.slane %v147_v7, %v1020_v5  ;;  %v379_v13 = vrot.slane %v368_v8, %v1020_v5  ;;  %v922_v15 = vld.sshfl [vmem:[%s1025_s14] sm:$0x33 pattern:$0x76325410]  ;;  %v305_v17 = vrot.slane %v291_v12, %v1020_v5  ;;  %v925_v7 = vld [vmem:[%s1122_s0 + $0x8] sm:$0xf] }
  0x13   : > { %v165_v14 = vrot.slane %v151_v11, %v1020_v5  ;;  %v236_v18 = vcombine.high %v922_v15, %v922_v15  ;;  %v241_v20 = vsel %vm180_vm0, %v922_v15, 0  ;;  %v372_v23 = vcombine.high %v368_v8, %v368_v8  ;;  %v449_v24 = vld [vmem:[%s1025_s14] sm:$0x3f] }
  0x14   : > { %307 = vrot.lane.b32.xlu1 %v298_v9, %s985_s15  ;;  %167 = vrot.lane.b32.xlu0 %v158_v10, %s986_s16  ;;  %v166_v16 = vcombine.high %v158_v10, %v158_v10  ;;  %v306_v21 = vcombine.high %v298_v9, %v298_v9  ;;  %v387_v22 = vcombine.high %v379_v13, %v379_v13  ;;  %v530_v29 = vld [vmem:[%s1025_s14] sm:$0x3f]  ;;  %v928_v10 = vld [vmem:[%s1122_s0 + $0xc] sm:$0xf] }
  0x15   : > { %923 = vmatprep.subr.msk.bf16.mxu1 %vm180_vm0, %v236_v18  ;;  %v386_v26 = vrot.slane %v372_v23, %v1020_v5  ;;  %v460_v27 = vrot.slane %v449_v24, %v1020_v5  ;;  %v453_v28 = vcombine.high %v449_v24, %v449_v24  ;;  %v541_v32 = vrot.slane %v530_v29, %v1020_v5  ;;  %v611_v35 = vld [vmem:[%s1025_s14] sm:$0x3f]  ;;  %v934_v23 = vld [vmem:[%s1122_s0 + $0x14] sm:$0xf] }
  0x16   : > { %261 = vmatpush1.bf16.msra.mxu1 %v241_v20  ;;  %v534_v34 = vcombine.high %v530_v29, %v530_v29  ;;  %v622_v37 = vrot.slane %v611_v35, %v1020_v5  ;;  %v615_v38 = vcombine.high %v611_v35, %v611_v35  ;;  %v692_v39 = vld [vmem:[%s1025_s14] sm:$0x3f]  ;;  %v937_v29 = vld [vmem:[%s1122_s0 + $0x18] sm:$0xf] }
  0x17   : > { %v468_v30 = vcombine.high %v460_v27, %v460_v27  ;;  %v467_v31 = vrot.slane %v453_v28, %v1020_v5  ;;  %v549_v33 = vcombine.high %v541_v32, %v541_v32  ;;  %v703_v42 = vrot.slane %v692_v39, %v1020_v5  ;;  %v773_v45 = vld [vmem:[%s1025_s14] sm:$0x3f] }
  0x18   : > { %388 = vrot.lane.b32.xlu0 %v379_v13, %s987_s17  ;;  %171 = vrot.lane.b32.xlu1 %v165_v14, %s986_s16  ;;  %v548_v36 = vrot.slane %v534_v34, %v1020_v5  ;;  %v630_v40 = vcombine.high %v622_v37, %v622_v37  ;;  %v629_v41 = vrot.slane %v615_v38, %v1020_v5 }
  0x19   : > { %924 = vmatmul.mubr.msk.bf16.vlgmr.msra.gmra.mxu1 %vm176_vm1, %v146_v25  ;;  %v711_v43 = vcombine.high %v703_v42, %v703_v42  ;;  %v696_v44 = vcombine.high %v692_v39, %v692_v39  ;;  %v784_v47 = vrot.slane %v773_v45, %v1020_v5  ;;  %v777_v48 = vcombine.high %v773_v45, %v773_v45 }
  0x1a   : > { %438 = vmatprep.mubr.bf16.mxu1 %v988_v19 }
  0x1b   : > { %v710_v46 = vrot.slane %v696_v44, %v1020_v5  ;;  %v792_v49 = vcombine.high %v784_v47, %v784_v47  ;;  %v791_v50 = vrot.slane %v777_v48, %v1020_v5 }
  0x1c   : > { %169 = vrot.lane.b32.xlu0 %v166_v16, %s986_s16  ;;  %311 = vrot.lane.b32.xlu1 %v305_v17, %s985_s15  ;;  %v931_v17 = vld [vmem:[%s1122_s0 + $0x10] sm:$0xf] }
  0x20   : > { %309 = vrot.lane.b32.xlu0 %v306_v21, %s985_s15  ;;  %390 = vrot.lane.b32.xlu1 %v387_v22, %s987_s17  ;;  %s948_s15 = sshll.u32 %s1126_s10, 4 }
  0x21   : > { %s143_s18 = scalar_lea.vmem %s1124_s2, %s948_s15 }
  0x24   : > { %392 = vrot.lane.b32.xlu0 %v386_v26, %s987_s17  ;;  %469 = vrot.lane.b32.xlu1 %v460_v27, %s989_s20 }
  0x28   : > { %471 = vrot.lane.b32.xlu0 %v468_v30, %s989_s20  ;;  %473 = vrot.lane.b32.xlu1 %v467_v31, %s989_s20 }
  0x2c   : > { %550 = vrot.lane.b32.xlu0 %v541_v32, %s990_s21  ;;  %552 = vrot.lane.b32.xlu1 %v549_v33, %s990_s21 }
  0x30   : > { %554 = vrot.lane.b32.xlu0 %v548_v36, %s990_s21  ;;  %631 = vrot.lane.b32.xlu1 %v622_v37, %s991_s22  ;;  %v940_v37 = vld [vmem:[%s1122_s0 + $0x1c] sm:$0xf] }
  0x34   : > { %633 = vrot.lane.b32.xlu0 %v630_v40, %s991_s22  ;;  %635 = vrot.lane.b32.xlu1 %v629_v41, %s991_s22 }
  0x38   : > { %712 = vrot.lane.b32.xlu0 %v703_v42, %s992_s23  ;;  %714 = vrot.lane.b32.xlu1 %v711_v43, %s992_s23 }
  0x3c   : > { %716 = vrot.lane.b32.xlu0 %v710_v46, %s992_s23  ;;  %793 = vrot.lane.b32.xlu1 %v784_v47, %s993_s24 }
  0x40   : > { %795 = vrot.lane.b32.xlu0 %v792_v49, %s993_s24  ;;  %797 = vrot.lane.b32.xlu1 %v791_v50, %s993_s24 }
  0x86   : > { %v308_v51 = vpop.permute.xlu1 %307  ;;  %v168_v52 = vpop.permute.xlu0 %167 }
  0x8a   : > { %v389_v53 = vpop.permute.xlu0 %388  ;;  %v172_v54 = vpop.permute.xlu1 %171 }
  0x8e   : > { %v170_v55 = vpop.permute.xlu0 %169  ;;  %v312_v56 = vpop.permute.xlu1 %311 }
  0x8f   : > { %v175_v57 = vsel %vm173_vm2, %v170_v55, %v172_v54  ;;  %v174_v58 = vsel %vm173_vm2, %v168_v52, %v170_v55 }
  0x90   : > { %920 = vmatprep.subr.msk.bf16.mxu0 %vm180_vm0, %v175_v57  ;;  %v182_v59 = vsel %vm180_vm0, %v174_v58, 0 }
  0x91   : > { %202 = vmatpush1.bf16.msra.mxu0 %v182_v59 }
  0x92   : > { %v310_v61 = vpop.permute.xlu0 %309  ;;  %v391_v62 = vpop.permute.xlu1 %390 }
  0x93   : > { %v314_v63 = vsel %vm313_vm3, %v308_v51, %v310_v61  ;;  %v315_v0 = vsel %vm313_vm3, %v310_v61, %v312_v56  ;;  %v395_v2 = vsel %vm394_vm4, %v389_v53, %v391_v62 }
  0x94   : > { %v320_v1 = vsel %vm180_vm0, %v314_v63, 0  ;;  %921 = vmatmul.mubr.msk.bf16.vlgmr.msra.gmra.mxu0 %vm176_vm1, %v919_v60  ;;  %926 = vmatprep.subr.msk.bf16.mxu0 %vm180_vm0, %v315_v0  ;;  %v401_v6 = vsel %vm180_vm0, %v395_v2, 0 }
  0x95   : > { %340 = vmatpush1.bf16.msra.mxu0 %v320_v1  ;;  %357 = vmatprep.mubr.bf16.mxu0 %v988_v19 }
  0x96   : > { %v393_v3 = vpop.permute.xlu0 %392  ;;  %v470_v4 = vpop.permute.xlu1 %469 }
  0x97   : > { %v396_v5 = vsel %vm394_vm4, %v391_v62, %v393_v3 }
  0x98   : > { %929 = vmatprep.subr.msk.bf16.mxu1 %vm180_vm0, %v396_v5 }
  0x99   : > { %421 = vmatpush1.bf16.msra.mxu1 %v401_v6 }
  0x9a   : > { %v472_v8 = vpop.permute.xlu0 %471  ;;  %v474_v9 = vpop.permute.xlu1 %473 }
  0x9b   : > { %v476_v11 = vsel %vm475_vm5, %v470_v4, %v472_v8  ;;  %v477_v12 = vsel %vm475_vm5, %v472_v8, %v474_v9 }
  0x9c   : > { %v482_v13 = vsel %vm180_vm0, %v476_v11, 0  ;;  %927 = vmatmul.mubr.msk.bf16.vlgmr.msra.gmra.mxu0 %vm176_vm1, %v925_v7  ;;  %932 = vmatprep.subr.msk.bf16.mxu0 %vm180_vm0, %v477_v12 }
  0x9d   : > { %502 = vmatpush1.bf16.msra.mxu0 %v482_v13  ;;  %930 = vmatmul.mubr.msk.bf16.vlgmr.msra.gmra.mxu1 %vm176_vm1, %v928_v10 }
  0x9e   : > { %v551_v14 = vpop.permute.xlu0 %550  ;;  %v553_v15 = vpop.permute.xlu1 %552  ;;  %519 = vmatprep.mubr.bf16.mxu0 %v988_v19  ;;  %600 = vmatprep.mubr.bf16.mxu1 %v988_v19 }
  0x9f   : > { %v557_v16 = vsel %vm556_vm6, %v551_v14, %v553_v15 }
  0xa0   : > { %v563_v22 = vsel %vm180_vm0, %v557_v16, 0 }
  0xa2   : > { %v555_v18 = vpop.permute.xlu0 %554  ;;  %v632_v20 = vpop.permute.xlu1 %631 }
  0xa3   : > { %v558_v21 = vsel %vm556_vm6, %v553_v15, %v555_v18 }
  0xa4   : > { %933 = vmatmul.mubr.msk.bf16.vlgmr.msra.gmra.mxu0 %vm176_vm1, %v931_v17  ;;  %935 = vmatprep.subr.msk.bf16.mxu1 %vm180_vm0, %v558_v21 }
  0xa5   : > { %583 = vmatpush1.bf16.msra.mxu1 %v563_v22  ;;  %681 = vmatprep.mubr.bf16.mxu0 %v988_v19 }
  0xa6   : > { %v634_v24 = vpop.permute.xlu0 %633  ;;  %v636_v25 = vpop.permute.xlu1 %635 }
  0xa7   : > { %v638_v26 = vsel %vm637_vm7, %v632_v20, %v634_v24  ;;  %v639_v27 = vsel %vm637_vm7, %v634_v24, %v636_v25 }
  0xa8   : > { %v644_v28 = vsel %vm180_vm0, %v638_v26, 0  ;;  %936 = vmatmul.mubr.msk.bf16.vlgmr.msra.gmra.mxu1 %vm176_vm1, %v934_v23  ;;  %938 = vmatprep.subr.msk.bf16.mxu0 %vm180_vm0, %v639_v27 }
  0xa9   : > { %664 = vmatpush1.bf16.msra.mxu0 %v644_v28  ;;  %762 = vmatprep.mubr.bf16.mxu1 %v988_v19 }
  0xaa   : > { %v713_v30 = vpop.permute.xlu0 %712  ;;  %v715_v31 = vpop.permute.xlu1 %714 }
  0xab   : > { %v719_v32 = vsel %vm718_vm8, %v713_v30, %v715_v31 }
  0xac   : > { %939 = vmatmul.mubr.msk.bf16.vlgmr.msra.gmra.mxu0 %vm176_vm1, %v937_v29  ;;  %v725_v36 = vsel %vm180_vm0, %v719_v32, 0 }
  0xad   : > { %843 = vmatprep.mubr.bf16.mxu0 %v988_v19  ;;  %v943_v19 = vld [vmem:[%s1122_s0 + $0x20] sm:$0xf] }
  0xae   : > { %v717_v33 = vpop.permute.xlu0 %716  ;;  %v794_v34 = vpop.permute.xlu1 %793 }
  0xaf   : > { %v720_v35 = vsel %vm718_vm8, %v715_v31, %v717_v33 }
  0xb0   : > { %941 = vmatprep.subr.msk.bf16.mxu1 %vm180_vm0, %v720_v35 }
  0xb1   : > { %745 = vmatpush1.bf16.msra.mxu1 %v725_v36 }
  0xb2   : > { %v796_v38 = vpop.permute.xlu0 %795  ;;  %v798_v39 = vpop.permute.xlu1 %797 }
  0xb3   : > { %v800_v40 = vsel %vm799_vm9, %v794_v34, %v796_v38  ;;  %v801_v41 = vsel %vm799_vm9, %v796_v38, %v798_v39 }
  0xb4   : > { %v806_v42 = vsel %vm180_vm0, %v800_v40, 0  ;;  %942 = vmatmul.mubr.msk.bf16.vlgmr.msra.gmra.mxu1 %vm176_vm1, %v940_v37  ;;  %944 = vmatprep.subr.msk.bf16.mxu0 %vm180_vm0, %v801_v41 }
  0xb5   : > { %826 = vmatpush1.bf16.msra.mxu0 %v806_v42 }
  0xb8   : > { %945 = vmatmul.mubr.msk.bf16.vlgmr.msra.gmra.mxu0 %vm176_vm1, %v943_v19 }
  0xd9   : > { %v280_v43 = vpop.f32.mrf.mxu1 }
  0xdb   : > { %v282_v44 = vpop.f32.mrf.mxu1 }
  0xdd   : > { %v284_v45 = vpop.f32.mrf.mxu1 }
  0xdf   : > { %v285_v46 = vpop.f32.mrf.mxu1 }
 0x154   : > { %v221_v47 = vpop.f32.mrf.mxu0 }
 0x155   : > { %v281_v63 = vadd.f32 %v280_v43, %v221_v47 }
 0x156   : > { %v223_v48 = vpop.f32.mrf.mxu0 }
 0x157   : > { %v283_v2 = vadd.f32 %v282_v44, %v223_v48 }
 0x158   : > { %v225_v49 = vpop.f32.mrf.mxu0 }
 0x15a   : > { %v226_v50 = vpop.f32.mrf.mxu0 }
 0x15c   : > { %v359_v51 = vpop.f32.mrf.mxu0 }
 0x15d   : > { %v440_v52 = vpop.f32.mrf.mxu1  ;;  %v366_v3 = vadd.f32 %v359_v51, %v281_v63 }
 0x15e   : > { %v361_v53 = vpop.f32.mrf.mxu0 }
 0x15f   : > { %v442_v54 = vpop.f32.mrf.mxu1  ;;  %v367_v6 = vadd.f32 %v361_v53, %v283_v2  ;;  %v447_v9 = vadd.f32 %v440_v52, %v366_v3 }
 0x160   : > { %v363_v55 = vpop.f32.mrf.mxu0 }
 0x161   : > { %v444_v56 = vpop.f32.mrf.mxu1  ;;  %v448_v11 = vadd.f32 %v442_v54, %v367_v6 }
 0x162   : > { %v364_v57 = vpop.f32.mrf.mxu0 }
 0x163   : > { %v445_v58 = vpop.f32.mrf.mxu1 }
 0x164   : > { %v521_v59 = vpop.f32.mrf.mxu0 }
 0x165   : > { %v528_v12 = vadd.f32 %v521_v59, %v447_v9 }
 0x166   : > { %v523_v60 = vpop.f32.mrf.mxu0 }
 0x167   : > { %v529_v14 = vadd.f32 %v523_v60, %v448_v11 }
 0x168   : > { %v525_v61 = vpop.f32.mrf.mxu0  ;;  %v602_v62 = vpop.f32.mrf.mxu1 }
 0x169   : > { %v609_v15 = vadd.f32 %v602_v62, %v528_v12 }
 0x16a   : > { %v526_v0 = vpop.f32.mrf.mxu0  ;;  %v604_v1 = vpop.f32.mrf.mxu1 }
 0x16b   : > { %v610_v17 = vadd.f32 %v604_v1, %v529_v14 }
 0x16c   : > { %v683_v4 = vpop.f32.mrf.mxu0  ;;  %v606_v5 = vpop.f32.mrf.mxu1 }
 0x16d   : > { %v690_v18 = vadd.f32 %v683_v4, %v609_v15 }
 0x16e   : > { %v685_v7 = vpop.f32.mrf.mxu0  ;;  %v607_v8 = vpop.f32.mrf.mxu1 }
 0x16f   : > { %v691_v21 = vadd.f32 %v685_v7, %v610_v17 }
 0x170   : > { %v687_v10 = vpop.f32.mrf.mxu0 }
 0x172   : > { %v688_v13 = vpop.f32.mrf.mxu0 }
 0x174   : > { %v764_v16 = vpop.f32.mrf.mxu1 }
 0x175   : > { %v771_v22 = vadd.f32 %v764_v16, %v690_v18 }
 0x176   : > { %v766_v20 = vpop.f32.mrf.mxu1 }
 0x177   : > { %v772_v25 = vadd.f32 %v766_v20, %v691_v21 }
 0x178   : > { %v845_v23 = vpop.f32.mrf.mxu0  ;;  %v768_v24 = vpop.f32.mrf.mxu1 }
 0x179   : > { %v852_v26 = vadd.f32 %v845_v23, %v771_v22 }
 0x17a   : > { %v847_v27 = vpop.f32.mrf.mxu0  ;;  %v769_v28 = vpop.f32.mrf.mxu1 }
 0x17b   : > { %854 = vst [vmem:[%s143_s18] sm:$0xff] %v852_v26  ;;  %v853_v29 = vadd.f32 %v847_v27, %v772_v25 }
 0x17c   : > { %v849_v30 = vpop.f32.mrf.mxu0 }
 0x17d   : > { %855 = vst [vmem:[%s143_s18 + $0x8] sm:$0xff] %v853_v29 }
 0x17e   : > { %v850_v31 = vpop.f32.mrf.mxu0 }
 0x17f PF: > { %s12_s9 = sadd.s32 1, %s982_s9  }
 0x180   : > { %p9_p4 = scmp.ge.s32.totalorder %s12_s9, 4  }
 0x182   :  { %11 = sbr.rel (!%p9_p4) target bundleno = 1 (0x1), region = 66 }

</bundles_post_ra>
